<compile_context>
chip_gen: v6e
topology: v6e:2x2x1
jax: 0.10.0
libtpu: 0.0.40
codegen_flags: <defaults>
</compile_context>

<pallas_src>
import functools

import jax
import jax.numpy as jnp
from jax import lax
from jax.experimental import pallas as pl
from jax.experimental.pallas import tpu as pltpu


def _sobel_kernel(x_ref, out_ref, *, scale, eps_eff):
    # x_ref block: (P, H, W) unpadded planes.
    x = x_ref[...].astype(jnp.float32)

    # Vertical neighbors with replicate boundary (sublane-axis shifts).
    #   up[r]   = x[max(r-1, 0)]
    #   down[r] = x[min(r+1, H-1)]
    up = jnp.concatenate([x[:, :1, :], x[:, :-1, :]], axis=1)
    down = jnp.concatenate([x[:, 1:, :], x[:, -1:, :]], axis=1)

    # Separable Sobel: vertical pass produces two small intermediates.
    s = up + 2.0 * x + down          # vertical smooth   -> feeds gx
    d = down - up                    # vertical difference -> feeds gy

    # Horizontal neighbors with replicate boundary (lane-axis shifts) applied
    # to the intermediates only (4 shifted operands instead of 6 on raw taps).
    s_l = jnp.concatenate([s[:, :, :1], s[:, :, :-1]], axis=2)   # s[c-1]
    s_r = jnp.concatenate([s[:, :, 1:], s[:, :, -1:]], axis=2)   # s[c+1]
    d_l = jnp.concatenate([d[:, :, :1], d[:, :, :-1]], axis=2)
    d_r = jnp.concatenate([d[:, :, 1:], d[:, :, -1:]], axis=2)

    gx = s_r - s_l                   # unscaled cross-correlation with kernel_x
    gy = d_l + 2.0 * d + d_r         # unscaled cross-correlation with kernel_y

    # scale * sqrt(gx^2 + gy^2 + eps/scale^2) == sqrt((s*gx)^2 + (s*gy)^2 + eps)
    mag = scale * jnp.sqrt(gx * gx + gy * gy + eps_eff)
    out_ref[...] = mag.astype(out_ref.dtype)


def _largest_divisor_leq(n: int, cap: int) -> int:
    cap = max(1, min(n, cap))
    for p in range(cap, 0, -1):
        if n % p == 0:
            return p
    return 1


def sobel_pallas(x, normalized: bool = True, eps: float = 1e-6):
    """x: (B, C, H, W) float array -> (B, C, H, W) sobel magnitude."""
    B, C, H, W = x.shape
    N = B * C
    xr = x.reshape(N, H, W)

    # Pick planes-per-block P: aim for ~2 MiB input blocks (mem-bound sweet
    # spot), keep at least ~4 grid steps for megacore, and make P divide N so
    # every block is full (no ragged edge).
    plane_bytes = H * W * x.dtype.itemsize
    target_block_bytes = 2 * 1024 * 1024
    p_cap = max(1, target_block_bytes // plane_bytes)
    p_cap = min(p_cap, max(1, pl.cdiv(N, 4)))
    P = _largest_divisor_leq(N, p_cap)
    # TODO(synk): strip-tile H (with a 1-row halo) for very large single planes
    # (> ~4 MiB each) so blocks still fit v7x's 64 MiB VMEM.

    scale = 0.125 if normalized else 1.0     # 1 / sum(|sobel 3x3|) = 1/8
    eps_eff = float(eps) / (scale * scale)

    out = pl.pallas_call(
        functools.partial(_sobel_kernel, scale=scale, eps_eff=eps_eff),
        out_shape=jax.ShapeDtypeStruct((N, H, W), x.dtype),
        grid=(N // P,),
        in_specs=[pl.BlockSpec((P, H, W), lambda i: (i, 0, 0))],
        out_specs=pl.BlockSpec((P, H, W), lambda i: (i, 0, 0)),
        compiler_params=pltpu.CompilerParams(
            dimension_semantics=("parallel",),
            vmem_limit_bytes=32 * 1024 * 1024,
        ),
    )(xr)
    return out.reshape(B, C, H, W)


def _sobel_reference(x, normalized: bool = True, eps: float = 1e-6):
    """Pure-JAX reference via lax conv (cross-correlation), for sanity check."""
    B, C, H, W = x.shape
    kx = jnp.array([[-1., 0., 1.], [-2., 0., 2.], [-1., 0., 1.]], jnp.float32)
    ky = kx.T
    if normalized:
        kx = kx / 8.0
        ky = ky / 8.0
    xp = jnp.pad(x.reshape(B * C, 1, H, W).astype(jnp.float32),
                 ((0, 0), (0, 0), (1, 1), (1, 1)), mode="edge")
    k = jnp.stack([kx, ky])[:, None]  # (2, 1, 3, 3)
    g = lax.conv_general_dilated(xp, k, window_strides=(1, 1), padding="VALID")
    gx = g[:, 0].reshape(B, C, H, W)
    gy = g[:, 1].reshape(B, C, H, W)
    return jnp.sqrt(gx * gx + gy * gy + eps).astype(x.dtype)


if __name__ == "__main__":
    key = jax.random.PRNGKey(0)
    x = jax.random.normal(key, (2, 4, 16, 16), dtype=jnp.float32)

    out = sobel_pallas(x, normalized=True, eps=1e-6)
    out = jax.block_until_ready(out)

    ref = _sobel_reference(x, normalized=True, eps=1e-6)
    assert out.shape == (2, 4, 16, 16)
    assert jnp.allclose(out, ref, atol=1e-5, rtol=1e-5), "mismatch vs reference"

    print("KERNEL_OK")
</pallas_src>

<mosaic_0001>
module attributes {stable_mosaic.version = 11 : i64} {
  func.func @_sobel_kernel(%arg0: i32, %arg1: memref<2x16x16xf32, #tpu.memory_space<vmem>>, %arg2: memref<2x16x16xf32, #tpu.memory_space<vmem>>) attributes {dimension_semantics = [#tpu.dimension_semantics<parallel>], iteration_bounds = array<i64: 4>, scalar_prefetch = 0 : i64, scratch_operands = 0 : i64, tpu.core_type = #tpu.core_type<tc>, window_params = [{transform_indices = @transform_0, window_bounds = array<i64: 2, 16, 16>}, {transform_indices = @transform_1, window_bounds = array<i64: 2, 16, 16>}]} {
    %c0 = arith.constant 0 : index
    %c0_0 = arith.constant 0 : index
    %c0_1 = arith.constant 0 : index
    %0 = vector.load %arg1[%c0, %c0_0, %c0_1] : memref<2x16x16xf32, #tpu.memory_space<vmem>>, vector<2x16x16xf32>
    %1 = vector.extract_strided_slice %0 {offsets = [0, 0, 0], sizes = [2, 1, 16], strides = [1, 1, 1]} : vector<2x16x16xf32> to vector<2x1x16xf32>
    %2 = vector.extract_strided_slice %0 {offsets = [0, 0, 0], sizes = [2, 15, 16], strides = [1, 1, 1]} : vector<2x16x16xf32> to vector<2x15x16xf32>
    %3 = tpu.concatenate %1, %2 in 1 : vector<2x1x16xf32>, vector<2x15x16xf32> -> vector<2x16x16xf32>
    %4 = vector.extract_strided_slice %0 {offsets = [0, 1, 0], sizes = [2, 15, 16], strides = [1, 1, 1]} : vector<2x16x16xf32> to vector<2x15x16xf32>
    %5 = vector.extract_strided_slice %0 {offsets = [0, 15, 0], sizes = [2, 1, 16], strides = [1, 1, 1]} : vector<2x16x16xf32> to vector<2x1x16xf32>
    %6 = tpu.concatenate %4, %5 in 1 : vector<2x15x16xf32>, vector<2x1x16xf32> -> vector<2x16x16xf32>
    %cst = arith.constant 2.000000e+00 : f32
    %7 = vector.broadcast %cst : f32 to vector<2x16x16xf32>
    %8 = arith.mulf %7, %0 : vector<2x16x16xf32>
    %9 = arith.addf %3, %8 : vector<2x16x16xf32>
    %10 = arith.addf %9, %6 : vector<2x16x16xf32>
    %11 = arith.subf %6, %3 : vector<2x16x16xf32>
    %12 = vector.extract_strided_slice %10 {offsets = [0, 0, 0], sizes = [2, 16, 1], strides = [1, 1, 1]} : vector<2x16x16xf32> to vector<2x16x1xf32>
    %13 = vector.extract_strided_slice %10 {offsets = [0, 0, 0], sizes = [2, 16, 15], strides = [1, 1, 1]} : vector<2x16x16xf32> to vector<2x16x15xf32>
    %14 = tpu.concatenate %12, %13 in 2 : vector<2x16x1xf32>, vector<2x16x15xf32> -> vector<2x16x16xf32>
    %15 = vector.extract_strided_slice %10 {offsets = [0, 0, 1], sizes = [2, 16, 15], strides = [1, 1, 1]} : vector<2x16x16xf32> to vector<2x16x15xf32>
    %16 = vector.extract_strided_slice %10 {offsets = [0, 0, 15], sizes = [2, 16, 1], strides = [1, 1, 1]} : vector<2x16x16xf32> to vector<2x16x1xf32>
    %17 = tpu.concatenate %15, %16 in 2 : vector<2x16x15xf32>, vector<2x16x1xf32> -> vector<2x16x16xf32>
    %18 = vector.extract_strided_slice %11 {offsets = [0, 0, 0], sizes = [2, 16, 1], strides = [1, 1, 1]} : vector<2x16x16xf32> to vector<2x16x1xf32>
    %19 = vector.extract_strided_slice %11 {offsets = [0, 0, 0], sizes = [2, 16, 15], strides = [1, 1, 1]} : vector<2x16x16xf32> to vector<2x16x15xf32>
    %20 = tpu.concatenate %18, %19 in 2 : vector<2x16x1xf32>, vector<2x16x15xf32> -> vector<2x16x16xf32>
    %21 = vector.extract_strided_slice %11 {offsets = [0, 0, 1], sizes = [2, 16, 15], strides = [1, 1, 1]} : vector<2x16x16xf32> to vector<2x16x15xf32>
    %22 = vector.extract_strided_slice %11 {offsets = [0, 0, 15], sizes = [2, 16, 1], strides = [1, 1, 1]} : vector<2x16x16xf32> to vector<2x16x1xf32>
    %23 = tpu.concatenate %21, %22 in 2 : vector<2x16x15xf32>, vector<2x16x1xf32> -> vector<2x16x16xf32>
    %24 = arith.subf %17, %14 : vector<2x16x16xf32>
    %cst_2 = arith.constant 2.000000e+00 : f32
    %25 = vector.broadcast %cst_2 : f32 to vector<2x16x16xf32>
    %26 = arith.mulf %25, %11 : vector<2x16x16xf32>
    %27 = arith.addf %20, %26 : vector<2x16x16xf32>
    %28 = arith.addf %27, %23 : vector<2x16x16xf32>
    %29 = arith.mulf %24, %24 : vector<2x16x16xf32>
    %30 = arith.mulf %28, %28 : vector<2x16x16xf32>
    %31 = arith.addf %29, %30 : vector<2x16x16xf32>
    %cst_3 = arith.constant 6.400000e-05 : f32
    %32 = vector.broadcast %cst_3 : f32 to vector<2x16x16xf32>
    %33 = arith.addf %31, %32 : vector<2x16x16xf32>
    %34 = math.sqrt %33 : vector<2x16x16xf32>
    %cst_4 = arith.constant 1.250000e-01 : f32
    %35 = vector.broadcast %cst_4 : f32 to vector<2x16x16xf32>
    %36 = arith.mulf %35, %34 : vector<2x16x16xf32>
    %c0_5 = arith.constant 0 : index
    %c0_6 = arith.constant 0 : index
    %c0_7 = arith.constant 0 : index
    %37 = vector.load %arg2[%c0_5, %c0_6, %c0_7] : memref<2x16x16xf32, #tpu.memory_space<vmem>>, vector<2x16x16xf32>
    tpu.vector_store %arg2[%c0_5, %c0_6, %c0_7], %36 {strides = array<i32>} : memref<2x16x16xf32, #tpu.memory_space<vmem>>, vector<2x16x16xf32>,
    return
  }
  func.func @transform_0(%arg0: i32) -> (i32, i32, i32) {
    %c0_i32 = arith.constant 0 : i32
    %c0_i32_0 = arith.constant 0 : i32
    %c0_i32_1 = arith.constant 0 : i32
    return %arg0, %c0_i32, %c0_i32_0 : i32, i32, i32
  }
  func.func @transform_1(%arg0: i32) -> (i32, i32, i32) {
    %c0_i32 = arith.constant 0 : i32
    %c0_i32_0 = arith.constant 0 : i32
    %c0_i32_1 = arith.constant 0 : i32
    return %arg0, %c0_i32, %c0_i32_0 : i32, i32, i32
  }
}

</mosaic_0001>

<bundles_post_ra>
// kernel: tpu_custom_call.1
= control target key start
LH: loop header
LB: loop body
LE: loop exit
PB: predicated region body
PF: predicated region fallthrough
CT: control target
= control target key end

     0   :  { %6 = vsyncpa [#allocation3], 0  ;;  %s816_s0 = inlined_call_operand.hbm [shape: f32[8,16,16], index: 0, kind: input, shape index: {}]   ;;  %s817_s1 = inlined_call_operand.hbm [shape: f32[8,16,16], index: 1, kind: output, shape index: {}]  }
   0x1   :  { %8 = vsyncpa [#allocation3 + $0x1], 0 }
   0x2   :  { %9 = vsyncpa [#allocation4], 0 }
   0x3   :  { %11 = vsyncpa [#allocation4 + $0x1], 0  ;;  %s611_s6 = smov 0   ;;  %s613_s7 = smov 0  }
   0x4   :  { %s615_s8 = smov 0   ;;  %s617_s9 = smov 0  }
   0x5 LB: > { %s632_s10 = sadd.s32 4294967295, %s591_s9   ;;  %s419_s11 = sadd.s32 4294967294, %s591_s9   ;;  %s591_s9 = sphi %s617_s9, %s831_s9   ;;  %s587_s8 = sphi %s615_s8, %s830_s8   ;;  %s583_s7 = sphi %s613_s7, %s829_s7   ;;  %s579_s6 = sphi %s611_s6, %s828_s6  }
   0x6   : > { %s636_s12 = sadd.s32 1, %s591_s9   ;;  %s24_s13 = sadd.s32 1, %s587_s8 }
   0x7   : > { %s21_s14 = ssub.s32 %s591_s9, %s636_s12  ;;  %p31_p0 = scmp.ne.s32.totalorder %s587_s8, %s583_s7 }
   0x8   : > { %p22_p1 = scmp.eq.s32.totalorder %s21_s14, 0  ;;  %p32_p2 = scmp.eq.s32.totalorder %s591_s9, 0 }
   0x9   : > { %p37_p3 = scmp.ne.s32.totalorder %s583_s7, %s579_s6  ;;  %p38_p4 = scmp.eq.s32.totalorder %s632_s10, 0 }
   0xa   : > { %s648_s15 = scalar_select %p22_p1, %s587_s8, %s24_s13  }
   0xb   : > { %p650_p5 = por %p32_p2, %p31_p0  ;;  %p654_p6 = por %p38_p4, %p37_p3 }
   0xc   : > { %p61_p7 = scmp.eq.s32.totalorder %s632_s10, 3  ;;  %p67_p8 = scmp.eq.s32.totalorder %s419_s11, 3 }
   0xd   : > { %s821_s17 = scalar_select %p654_p6, 1, 0 }
   0xe   : > { %p451_p9 = scmp.lt.s32.totalorder %s591_s9, 4  ;;  %p660_p10 = por %p61_p7, %p31_p0 }
   0xf   : > { %p664_p11 = por %p67_p8, %p37_p3  ;;  %s87_s20 = sand.u32 1, %s587_s8  }
  0x10   : > { %s822_s18 = scalar_select %p660_p10, 1, 0 }
  0x11   : > { %s823_s19 = scalar_select %p664_p11, 1, 0 }
  0x12   : > { %s436_s21 = sshll.u32 %s591_s9, 9  ;;  %s422_s22 = sshll.u32 %s87_s20, 5 }
  0x13   : > { %s673_s25 = scalar_lea.hbm %s816_s0, %s436_s21  ;;  %s91_s26 = scalar_lea.vmem [#allocation2], %s422_s22 }
  0x14   : > { %s99_s27 = sshll.u32 %s91_s26, 4  ;;  %p677_p12 = pnand %p451_p9, %p650_p5  ;;  %s681_s27 = int_to_ptr.vmem [resolvable:$true] %s99_s27 }
  0x15   : > { %s683_s29 = scalar_lea.sflag [#allocation3], %s87_s20  ;;  %s499_s30 = scalar_lea.hbm %s673_s25, 512 }
  0x16   : > { %p500_p13 = scmp.ne.s32.totalorder %s673_s25, %s499_s30  ;;  %p501_p0 = pneg %p677_p12 }
  0x17   : > { %s504_s4 = scalar_lea.hbm %s816_s0, 2048  ;;  %p505_p3 = scmp.lt.s32.totalorder %s673_s25, %s816_s0 }
  0x18   : > { %p502_p1 = pnand %p501_p0, %p500_p13  ;;  %p506_p4 = scmp.lt.s32.totalorder %s504_s4, %s499_s30 }
  0x1a   : > { %p503_p2 = pneg %p502_p1  ;;  %p507_p5 = por %p506_p4, %p505_p3 }
  0x1c   : > { %p508_p7 = pnand %p507_p5, %p503_p2 }
  0x1e   : > { %511 = shalt.err (!%p508_p7)
}
  0x1f   : > { %s512_s13 = scalar_lea.vmem %s681_s27, 512  ;;  %s593_s14 = smov [#allocation2]  }
  0x20   : > { %p513_p8 = scmp.ne.s32.totalorder %s681_s27, %s512_s13  ;;  %s517_s16 = sshll.u32 %s593_s14, 4  ;;  %s518_s16 = int_to_ptr.vmem [resolvable:$false] %s517_s16 }
  0x21   : > { %s519_s20 = scalar_lea.vmem %s518_s16, 1024  ;;  %p520_p1 = scmp.lt.s32.totalorder %s681_s27, %s518_s16 }
  0x22   : > { %p515_p9 = pnand %p513_p8, %p501_p0  ;;  %p521_p11 = scmp.lt.s32.totalorder %s519_s20, %s512_s13 }
  0x24   : > { %p516_p13 = pneg %p515_p9  ;;  %p522_p10 = por %p521_p11, %p520_p1 }
  0x26   : > { %p523_p6 = pnand %p522_p10, %p516_p13 }
  0x28   : > { %526 = shalt.err (!%p523_p6)
}
  0x29   : > { %s594_s21 = smov 128   ;;  %s595_s22 = smov 8  }
  0x2a   : > { %446 = dma.hbm_to_vmem [thread:$0]  (!%p677_p12), %s673_s25, 512, %s681_s27, %s683_s29, %s594_s21, %s594_s21, %s595_s22  }
  0x2b   : > { %p426_p0 = scmp.ge.s32.totalorder %s591_s9, 1  ;;  %p107_p2 = scmp.lt.s32.totalorder %s591_s9, 5 }
  0x2d   : > { %p108_p3 = pnand %p426_p0, %p107_p2 }
  0x2e   : > { %s707_s23 = sand.u32 (!%p108_p3), 1, %s583_s7   ;;  %p825_p6 = scmp.ne.s32.totalorder (!%p108_p3), %s821_s17, 0 }
  0x2f   : > { %111 = sbr.rel (%p108_p3) target bundleno = 247 (0xf7), region = 24  ;;  %s427_s24 = sshll.u32 (!%p108_p3), %s707_s23, 5 }
  0x30   : > { %s114_s26 = scalar_lea.sflag (!%p108_p3), [#allocation3], %s707_s23  ;;  %s117_s30 = scalar_lea.vmem (!%p108_p3), [#allocation2], %s427_s24 }
  0x34   : > { %570 = dma.done.wait (%p825_p6), %s114_s26, 512  }
  0x35   : > { %572 = vsyncadd (%p825_p6), %s114_s26, 4294966784  ;;  %v140_v0 = vld [vmem:[%s117_s30 + $0x10] sm:$0xff]  ;;  %v141_v1 = vld [vmem:[%s117_s30 + $0x18] sm:$0xff]  ;;  %vm146_vm0 = vcmask 1040384   ;;  %vm159_vm1 = vcmask 1046528   ;;  %s596_s17 = smov 1  }
  0x36   : > { %v138_v2 = vld [vmem:[%s117_s30] sm:$0xff]  ;;  %v150_v3 = vrot.slane %v140_v0, 7  ;;  %v163_v4 = vrot.slane %v140_v0, 1  ;;  %v164_v5 = vrot.slane %v141_v1, 1  ;;  %v139_v6 = vld [vmem:[%s117_s30 + $0x8] sm:$0xff]  ;;  %v151_v10 = vrot.slane %v141_v1, 7 }
  0x37   : > { %v147_v7 = vrot.slane %v138_v2, 7  ;;  %v160_v8 = vrot.slane %v138_v2, 1  ;;  %v161_v9 = vrot.slane %v139_v6, 1  ;;  %v148_v11 = vrot.slane %v139_v6, 7  ;;  %s597_s25 = smov 127   ;;  %s135_s27 = scalar_lea.vmem [#allocation5], %s427_s24 }
  0x38   : > { %v158_v12 = vsel %vm146_vm0, %v140_v0, %v150_v3  ;;  %v165_v13 = vsel %vm159_vm1, %v163_v4, %v164_v5  ;;  %v171_v15 = vsel %vm159_vm1, %v164_v5, %v141_v1  ;;  %v152_v18 = vsel %vm146_vm0, %v150_v3, %v151_v10  ;;  %s438_s28 = sshll.u32 %s632_s10, 9  ;;  %s346_s29 = sshll.u32 %s135_s27, 4  ;;  %s772_s29 = int_to_ptr.vmem [resolvable:$true] %s346_s29 }
  0x39   : > { %v157_v14 = vsel %vm146_vm0, %v138_v2, %v147_v7  ;;  %v721_v16 = vsub.f32 %v165_v13, %v158_v12  ;;  %v162_v17 = vsel %vm159_vm1, %v160_v8, %v161_v9  ;;  %v149_v19 = vsel %vm146_vm0, %v147_v7, %v148_v11  ;;  %s770_s4 = scalar_lea.hbm %s817_s1, %s438_s28  ;;  %s332_s10 = scalar_lea.sflag [#allocation4], %s707_s23 }
  0x3a   : > { %v726_v20 = vsub.f32 %v162_v17, %v157_v14  ;;  %v170_v21 = vsel %vm159_vm1, %v161_v9, %v139_v6  ;;  %v172_v22 = vmul.f32 2.0, %v138_v2  ;;  %v730_v23 = vsub.f32 %v171_v15, %v152_v18  ;;  %s527_s5 = scalar_lea.vmem %s772_s29, 512  ;;  %p826_p11 = scmp.ne.s32.totalorder %s822_s18, 0 }
  0x3b   : > { %234 = vrot.lane.b32.xlu1 %v721_v16, %s596_s17  ;;  %v173_v24 = vmul.f32 2.0, %v139_v6  ;;  %v175_v25 = vmul.f32 2.0, %v141_v1  ;;  %v185_v26 = vsub.f32 %v170_v21, %v149_v19  ;;  %v174_v28 = vmul.f32 2.0, %v140_v0  ;;  %p528_p10 = scmp.ne.s32.totalorder %s772_s29, %s527_s5  ;;  %s598_s11 = smov [#allocation5]  }
  0x3c   : > { %230 = vrot.lane.b32.xlu0 %v726_v20, %s596_s17  ;;  %v176_v27 = vadd.f32 %v172_v22, %v157_v14  ;;  %vm221_vm2 = vcmask 121856   ;;  %vm204_vm3 = vcmask 7168   ;;  %v266_v48 = vmul.f32 2.0, %v726_v20  ;;  %s531_s13 = sshll.u32 %s598_s11, 4  ;;  %s532_s13 = int_to_ptr.vmem [resolvable:$false] %s531_s13 }
  0x3d   : > { %v177_v29 = vadd.f32 %v173_v24, %v149_v19  ;;  %v179_v31 = vadd.f32 %v175_v25, %v152_v18  ;;  %v178_v33 = vadd.f32 %v174_v28, %v158_v12  ;;  %v267_v46 = vmul.f32 2.0, %v185_v26  ;;  %p529_p12 = pnand %p528_p10, %p826_p11  ;;  %s533_s14 = scalar_lea.vmem %s532_s13, 1024 }
  0x3e   : > { %v180_v32 = vadd.f32 %v176_v27, %v162_v17  ;;  %v268_v55 = vmul.f32 2.0, %v721_v16  ;;  %v269_v56 = vmul.f32 2.0, %v730_v23  ;;  %vm326_vm8 = vcmask 130048   ;;  %p534_p5 = scmp.lt.s32.totalorder %s772_s29, %s532_s13  ;;  %p535_p7 = scmp.lt.s32.totalorder %s533_s14, %s527_s5 }
  0x3f   : > { %236 = vrot.lane.b32.xlu1 %v730_v23, %s596_s17  ;;  %v181_v30 = vadd.f32 %v177_v29, %v170_v21  ;;  %v183_v34 = vadd.f32 %v179_v31, %v171_v15  ;;  %v182_v35 = vadd.f32 %v178_v33, %v165_v13  ;;  %p530_p4 = pneg %p529_p12 }
  0x40   : > { %232 = vrot.lane.b32.xlu0 %v185_v26, %s596_s17  ;;  %p536_p8 = por %p535_p7, %p534_p5 }
  0x42   : > { %p537_p9 = pnand %p536_p8, %p530_p4 }
  0x43   : > { %194 = vrot.lane.b32.xlu1 %v181_v30, %s596_s17 }
  0x44   : > { %192 = vrot.lane.b32.xlu0 %v180_v32, %s596_s17 }
  0x47   : > { %198 = vrot.lane.b32.xlu1 %v183_v34, %s596_s17 }
  0x48   : > { %196 = vrot.lane.b32.xlu0 %v182_v35, %s596_s17 }
  0x4b   : > { %211 = vrot.lane.b32.xlu1 %v181_v30, %s597_s25 }
  0x4c   : > { %209 = vrot.lane.b32.xlu0 %v180_v32, %s597_s25 }
  0x4f   : > { %215 = vrot.lane.b32.xlu1 %v183_v34, %s597_s25 }
  0x50   : > { %213 = vrot.lane.b32.xlu0 %v182_v35, %s597_s25 }
  0x53   : > { %248 = vrot.lane.b32.xlu1 %v185_v26, %s597_s25 }
  0x54   : > { %246 = vrot.lane.b32.xlu0 %v726_v20, %s597_s25 }
  0x57   : > { %252 = vrot.lane.b32.xlu1 %v730_v23, %s597_s25 }
  0x58   : > { %250 = vrot.lane.b32.xlu0 %v721_v16, %s597_s25 }
  0xad   : > { %v235_v36 = vpop.permute.xlu1 %234 }
  0xae   : > { %v231_v37 = vpop.permute.xlu0 %230  ;;  %v244_v54 = vsel %vm204_vm3, %v721_v16, %v235_v36 }
  0xaf   : > { %v242_v52 = vsel %vm204_vm3, %v726_v20, %v231_v37  ;;  %v272_v6 = vadd.f32 %v268_v55, %v244_v54 }
  0xb0   : > { %v270_v63 = vadd.f32 %v266_v48, %v242_v52 }
  0xb1   : > { %v237_v38 = vpop.permute.xlu1 %236 }
  0xb2   : > { %v233_v39 = vpop.permute.xlu0 %232  ;;  %v245_v58 = vsel %vm204_vm3, %v730_v23, %v237_v38 }
  0xb3   : > { %v243_v49 = vsel %vm204_vm3, %v185_v26, %v233_v39  ;;  %v273_v7 = vadd.f32 %v269_v56, %v245_v58 }
  0xb4   : > { %v271_v59 = vadd.f32 %v267_v46, %v243_v49 }
  0xb5   : > { %v195_v40 = vpop.permute.xlu1 %194 }
  0xb6   : > { %v193_v41 = vpop.permute.xlu0 %192  ;;  %v206_v57 = vsel %vm204_vm3, %v181_v30, %v195_v40 }
  0xb7   : > { %v205_v60 = vsel %vm204_vm3, %v180_v32, %v193_v41 }
  0xb9   : > { %v199_v42 = vpop.permute.xlu1 %198 }
  0xba   : > { %v197_v43 = vpop.permute.xlu0 %196  ;;  %v208_v11 = vsel %vm204_vm3, %v183_v34, %v199_v42 }
  0xbb   : > { %v207_v10 = vsel %vm204_vm3, %v182_v35, %v197_v43 }
  0xbd   : > { %v212_v44 = vpop.permute.xlu1 %211 }
  0xbe   : > { %v210_v45 = vpop.permute.xlu0 %209  ;;  %v223_v50 = vsel %vm221_vm2, %v212_v44, %v181_v30 }
  0xbf   : > { %v222_v53 = vsel %vm221_vm2, %v210_v45, %v180_v32  ;;  %v263_v61 = vsub.f32 %v223_v50, %v206_v57 }
  0xc0   : > { %v262_v0 = vsub.f32 %v222_v53, %v205_v60 }
  0xc1   : > { %v216_v47 = vpop.permute.xlu1 %215  ;;  %v279_v12 = vmul.f32 %v263_v61, %v263_v61 }
  0xc2   : > { %v214_v51 = vpop.permute.xlu0 %213  ;;  %v225_v3 = vsel %vm221_vm2, %v216_v47, %v183_v34  ;;  %v278_v15 = vmul.f32 %v262_v0, %v262_v0 }
  0xc3   : > { %v224_v8 = vsel %vm221_vm2, %v214_v51, %v182_v35  ;;  %v265_v17 = vsub.f32 %v225_v3, %v208_v11 }
  0xc4   : > { %v264_v21 = vsub.f32 %v224_v8, %v207_v10 }
  0xc5   : > { %v249_v62 = vpop.permute.xlu1 %248  ;;  %v281_v33 = vmul.f32 %v265_v17, %v265_v17 }
  0xc6   : > { %v247_v1 = vpop.permute.xlu0 %246  ;;  %v259_v2 = vsel %vm221_vm2, %v249_v62, %v185_v26  ;;  %v280_v32 = vmul.f32 %v264_v21, %v264_v21 }
  0xc7   : > { %v258_v4 = vsel %vm221_vm2, %v247_v1, %v726_v20  ;;  %v275_v5 = vadd.f32 %v271_v59, %v259_v2 }
  0xc8   : > { %v274_v9 = vadd.f32 %v270_v63, %v258_v4 }
  0xc9   : > { %v283_v13 = vmul.f32 %v275_v5, %v275_v5  ;;  %v253_v14 = vpop.permute.xlu1 %252 }
  0xca   : > { %v282_v18 = vmul.f32 %v274_v9, %v274_v9  ;;  %v251_v19 = vpop.permute.xlu0 %250  ;;  %v261_v20 = vsel %vm221_vm2, %v253_v14, %v730_v23 }
  0xcb   : > { %v287_v22 = vadd.f32 %v283_v13, %v279_v12  ;;  %v260_v24 = vsel %vm221_vm2, %v251_v19, %v721_v16  ;;  %v277_v25 = vadd.f32 %v273_v7, %v261_v20 }
  0xcc   : > { %v286_v26 = vadd.f32 %v282_v18, %v278_v15  ;;  %v276_v27 = vadd.f32 %v272_v6, %v260_v24 }
  0xcd   : > { %v291_v28 = vadd.f32 6.4e-05, %v287_v22  ;;  %v285_v29 = vmul.f32 %v277_v25, %v277_v25 }
  0xce   : > { %v290_v30 = vadd.f32 6.4e-05, %v286_v26  ;;  %v284_v31 = vmul.f32 %v276_v27, %v276_v27 }
  0xcf   : > { %491 = vrsqrt.f32 %v291_v28  ;;  %v289_v35 = vadd.f32 %v285_v29, %v281_v33  ;;  %vm303_vm4 = vcmp.eq.f32.partialorder %v291_v28, inf  ;;  %v306_v40 = vand.u32 2147483648, %v291_v28 }
  0xd0   : > { %493 = vrsqrt.f32 %v290_v30  ;;  %v288_v34 = vadd.f32 %v284_v31, %v280_v32  ;;  %vm296_vm5 = vcmp.eq.f32.partialorder %v290_v30, inf  ;;  %v299_v41 = vand.u32 2147483648, %v290_v30 }
  0xd1   : > { %v293_v23 = vadd.f32 6.4e-05, %v289_v35  ;;  %vm305_vm6 = vcmp.eq.f32.partialorder %v291_v28, 0.0  ;;  %vm298_vm7 = vcmp.eq.f32.partialorder %v290_v30, 0.0 }
  0xd2   : > { %v292_v36 = vadd.f32 6.4e-05, %v288_v34 }
  0xd3   : > { %vm317_vm11 = vcmp.eq.f32.partialorder %v293_v23, inf  ;;  %v320_v54 = vand.u32 2147483648, %v293_v23  ;;  %vm319_vm12 = vcmp.eq.f32.partialorder %v293_v23, 0.0 }
  0xd4   : > { %495 = vrsqrt.f32 %v292_v36  ;;  %vm310_vm9 = vcmp.eq.f32.partialorder %v292_v36, inf  ;;  %v313_v51 = vand.u32 2147483648, %v292_v36  ;;  %vm312_vm10 = vcmp.eq.f32.partialorder %v292_v36, 0.0 }
  0xd5   : > { %497 = vrsqrt.f32 %v293_v23 }
  0xdc   : > { %v492_v37 = vpop.eup %491 }
  0xdd   : > { %v494_v38 = vpop.eup %493  ;;  %v302_v16 = vmul.f32 %v492_v37, %v291_v28 }
  0xde   : > { %v295_v39 = vmul.f32 %v494_v38, %v290_v30 }
  0xdf   : > { %v304_v42 = vsel %vm303_vm4, %v291_v28, %v302_v16 }
  0xe0   : > { %v297_v43 = vsel %vm296_vm5, %v290_v30, %v295_v39  ;;  %v307_v44 = vsel %vm305_vm6, %v306_v40, %v304_v42 }
  0xe1   : > { %v300_v45 = vsel %vm298_vm7, %v299_v41, %v297_v43  ;;  %v323_v46 = vmul.f32 0.125, %v307_v44  ;;  %v496_v47 = vpop.eup %495 }
  0xe2   : > { %v322_v48 = vmul.f32 0.125, %v300_v45  ;;  %v498_v49 = vpop.eup %497  ;;  %v309_v50 = vmul.f32 %v496_v47, %v292_v36 }
  0xe3   : > { %328 = vst.msk [vmem:[%s135_s27 + $0x8] sm:$0xff] %vm326_vm8, %v323_v46  ;;  %v316_v52 = vmul.f32 %v498_v49, %v293_v23 }
  0xe4   : > { %327 = vst.msk [vmem:[%s135_s27] sm:$0xff] %vm326_vm8, %v322_v48  ;;  %v311_v53 = vsel %vm310_vm9, %v292_v36, %v309_v50 }
  0xe5   : > { %v314_v55 = vsel %vm312_vm10, %v313_v51, %v311_v53  ;;  %v318_v56 = vsel %vm317_vm11, %v293_v23, %v316_v52 }
  0xe6   : > { %v324_v57 = vmul.f32 0.125, %v314_v55  ;;  %v321_v58 = vsel %vm319_vm12, %v320_v54, %v318_v56 }
  0xe7   : > { %v325_v59 = vmul.f32 0.125, %v321_v58 }
  0xe8   : > { %329 = vst.msk [vmem:[%s135_s27 + $0x10] sm:$0xff] %vm326_vm8, %v324_v57 }
  0xe9   : > { %330 = vst.msk [vmem:[%s135_s27 + $0x18] sm:$0xff] %vm326_vm8, %v325_v59 }
  0xea   : > { %540 = shalt.err (!%p537_p9)
}
  0xeb   : > { %s541_s16 = scalar_lea.hbm %s770_s4, 512  ;;  %s545_s22 = scalar_lea.hbm %s817_s1, 2048 }
  0xec   : > { %p542_p13 = scmp.ne.s32.totalorder %s770_s4, %s541_s16  ;;  %p546_p2 = scmp.lt.s32.totalorder %s770_s4, %s817_s1 }
  0xed   : > { %p547_p3 = scmp.lt.s32.totalorder %s545_s22, %s541_s16 }
  0xee   : > { %p543_p1 = pnand %p542_p13, %p826_p11 }
  0xef   : > { %p548_p6 = por %p547_p3, %p546_p2 }
  0xf0   : > { %p544_p0 = pneg %p543_p1 }
  0xf2   : > { %p549_p10 = pnand %p548_p6, %p544_p0 }
  0xf4   : > { %552 = shalt.err (!%p549_p10)
}
  0xf5   : > { %s599_s30 = smov 128   ;;  %s600_s17 = smov 8  }
  0xf6   : > { %441 = dma.vmem_to_hbm [thread:$0]  (%p826_p11), %s772_s29, 512, %s770_s4, %s332_s10, %s599_s30, %s599_s30, %s600_s17  }
  0xf7 PF: > { %p452_p12 = scmp.ge.s32.totalorder %s591_s9, 2  ;;  %s361_s25 = sand.u32 1, %s579_s6  }
  0xf8   : > { %p827_p4 = scmp.ne.s32.totalorder %s823_s19, 0  ;;  %s362_s27 = scalar_lea.sflag [#allocation4], %s361_s25 }
  0xfa   : > { %p448_p5 = pnand %p452_p12, %p827_p4 }
  0xfc   : > { %p449_p7 = pneg %p448_p5 }
  0xfe   : > { %574 = dma.done.wait (%p449_p7), %s362_s27, 512  }
  0xff   : > { %576 = vsyncadd (%p449_p7), %s362_s27, 4294966784  ;;  %p14_p8 = scmp.ge.s32.totalorder %s636_s12, 6   ;;  %s828_s6 = smov %s583_s7 }
 0x100   : > { %s829_s7 = smov %s587_s8  ;;  %s830_s8 = smov %s648_s15 }
 0x101   : > { %s831_s9 = smov %s636_s12  ;;  %16 = sbr.rel (!%p14_p8) target bundleno = 5 (0x5), region = 69 }
 0x106   :  { %367 = vsyncpa [#allocation3], 1 }
 0x107   :  { %369 = vsyncpa [#allocation3 + $0x1], 1 }
 0x108   :  { %370 = vsyncpa [#allocation4], 1 }
 0x109   :  { %372 = vsyncpa [#allocation4 + $0x1], 1 }

</bundles_post_ra>
